<compile_context>
chip_gen: v6e
topology: v6e:2x2x1
jax: 0.10.0
libtpu: 0.0.40
codegen_flags: <defaults>
</compile_context>

<pallas_src>
import jax
import jax.numpy as jnp
from jax.experimental import pallas as pl
from jax.experimental.pallas import tpu as pltpu

# ---- Config (matches the module's structure) --------------------------------
MLP_INPUT_SIZE = 588        # 3 layers * 196 patches
MLP_HIDDEN_SIZE_1 = 256
MLP_HIDDEN_SIZE_2 = 128
MLP_NUM_CONCEPTS = 10
BN_EPS = 1e-5
BATCH = 8

H1 = MLP_HIDDEN_SIZE_1
H2 = MLP_HIDDEN_SIZE_2
D_PAD = 640                 # 588 rounded up to a multiple of 128 (lane-dense K)
C_PAD = 128                 # output head padded -> lane-dense (unmasked) store


# ---- Kernel -----------------------------------------------------------------
def mlp_kernel(x_ref, w1_ref, w2_ref, w3_ref, b_ref, o_ref):
    """BN-folded MLP: 3 matmuls + 2 ReLUs, f32 intermediates & accumulation."""
    x = x_ref[...]                                            # (B, D_PAD) f32

    # Layer 1: (BN1 + Linear1 + BN2) folded into w1/b1, then ReLU.
    h = jnp.dot(x, w1_ref[...].astype(jnp.float32),
                preferred_element_type=jnp.float32) + b_ref[:, 0:H1]
    h = jnp.maximum(h, 0.0)
    # TODO(synk): training-mode Dropout (random masking) not implemented; eval mode = identity.

    # Layer 2: (Linear2 + BN3) folded into w2/b2, then ReLU.
    h = jnp.dot(h, w2_ref[...].astype(jnp.float32),
                preferred_element_type=jnp.float32) + b_ref[:, H1:H1 + H2]
    h = jnp.maximum(h, 0.0)

    # Output head (zero-padded to C_PAD lanes -> unmasked vst).
    out = jnp.dot(h, w3_ref[...].astype(jnp.float32),
                  preferred_element_type=jnp.float32) + b_ref[:, H1 + H2:H1 + H2 + C_PAD]
    o_ref[...] = out.astype(o_ref.dtype)


# ---- Wrapper: BN folding / padding / packing --------------------------------
def fold_params(p):
    """Fold eval-mode BatchNorms into the linears (in f32), pad, pack, cast.

    Returns (w1_bf16, w2_bf16, w3_bf16, packed_biases_f32).
    """
    def bn_affine(g, be, m, v):
        s = g * jax.lax.rsqrt(v + BN_EPS)    # (1, d) scale
        t = be - m * s                       # (1, d) shift
        return s, t

    s1, t1 = bn_affine(p["g1"], p["be1"], p["m1"], p["v1"])
    s2, t2 = bn_affine(p["g2"], p["be2"], p["m2"], p["v2"])
    s3, t3 = bn_affine(p["g3"], p["be3"], p["m3"], p["v3"])

    # BN1 -> scale W1's input rows; BN2 -> scale W1's output cols + bias.
    w1 = p["w1"] * s1.reshape(-1, 1) * s2
    b1 = (t1 @ p["w1"] + p["b1"]) * s2 + t2
    # BN3 -> scale W2's output cols + bias.
    w2 = p["w2"] * s3
    b2 = p["b2"] * s3 + t3
    w3 = p["w3"]
    b3 = p["b3"]

    # Zero-pad K (input features) to 640: zero rows contribute nothing to x @ W1.
    w1 = jnp.pad(w1, ((0, D_PAD - w1.shape[0]), (0, 0)))
    # Zero-pad the output head to 128 lanes.
    w3 = jnp.pad(w3, ((0, 0), (0, C_PAD - w3.shape[1])))
    b3 = jnp.pad(b3, ((0, 0), (0, C_PAD - b3.shape[1])))

    biases = jnp.concatenate([b1, b2, b3], axis=1).astype(jnp.float32)  # (1, 512)
    return (w1.astype(jnp.bfloat16),
            w2.astype(jnp.bfloat16),
            w3.astype(jnp.bfloat16),
            biases)


def _run_fused(x, w1, w2, w3, biases):
    """Pad x, run the fused kernel, slice the real logits back out."""
    B = x.shape[0]
    x_pad = jnp.pad(x.astype(jnp.float32), ((0, 0), (0, D_PAD - x.shape[1])))

    vmem = pl.BlockSpec(memory_space=pltpu.MemorySpace.VMEM)
    out = pl.pallas_call(
        mlp_kernel,
        out_shape=jax.ShapeDtypeStruct((B, C_PAD), jnp.float32),
        in_specs=[vmem] * 5,
        out_specs=vmem,
        compiler_params=pltpu.CompilerParams(vmem_limit_bytes=8 << 20),
    )(x_pad, w1, w2, w3, biases)
    return out[:, :MLP_NUM_CONCEPTS]


_run_fused_jit = jax.jit(_run_fused)


def attention_to_concept_mlp(x, fused):
    """Run the fused MLP kernel. x: (B, 588) -> (B, 10) float32."""
    w1, w2, w3, biases = fused
    return _run_fused_jit(x, w1, w2, w3, biases)


# ---- Params / reference ------------------------------------------------------
def xavier_uniform(key, fan_in, fan_out):
    limit = jnp.sqrt(6.0 / (fan_in + fan_out))
    return jax.random.uniform(
        key, (fan_in, fan_out), dtype=jnp.float32, minval=-limit, maxval=limit
    )


def init_params(key):
    k1, k2, k3 = jax.random.split(key, 3)
    D, C = MLP_INPUT_SIZE, MLP_NUM_CONCEPTS

    def bn_params(dim):
        # PyTorch BatchNorm1d defaults: weight=1, bias=0, running_mean=0, running_var=1
        return (
            jnp.ones((1, dim), jnp.float32),
            jnp.zeros((1, dim), jnp.float32),
            jnp.zeros((1, dim), jnp.float32),
            jnp.ones((1, dim), jnp.float32),
        )

    g1, be1, m1, v1 = bn_params(D)
    g2, be2, m2, v2 = bn_params(H1)
    g3, be3, m3, v3 = bn_params(H2)

    return {
        "g1": g1, "be1": be1, "m1": m1, "v1": v1,
        "w1": xavier_uniform(k1, D, H1), "b1": jnp.zeros((1, H1), jnp.float32),
        "g2": g2, "be2": be2, "m2": m2, "v2": v2,
        "w2": xavier_uniform(k2, H1, H2), "b2": jnp.zeros((1, H2), jnp.float32),
        "g3": g3, "be3": be3, "m3": m3, "v3": v3,
        "w3": xavier_uniform(k3, H2, C), "b3": jnp.zeros((1, C), jnp.float32),
    }


def _bn(x, gamma, beta, mean, var):
    inv = jax.lax.rsqrt(var + BN_EPS)
    return (x - mean) * inv * gamma + beta


def reference_forward(x, p):
    """Pure-JAX f32 reference of the original (un-fused) eval-mode module."""
    h = _bn(x, p["g1"], p["be1"], p["m1"], p["v1"])
    h = h @ p["w1"] + p["b1"]
    h = jnp.maximum(_bn(h, p["g2"], p["be2"], p["m2"], p["v2"]), 0.0)
    h = h @ p["w2"] + p["b2"]
    h = jnp.maximum(_bn(h, p["g3"], p["be3"], p["m3"], p["v3"]), 0.0)
    return h @ p["w3"] + p["b3"]


if __name__ == "__main__":
    key = jax.random.PRNGKey(0)
    kx, kp = jax.random.split(key)

    x = jax.random.normal(kx, (BATCH, MLP_INPUT_SIZE), dtype=jnp.float32)
    params = init_params(kp)
    fused = fold_params(params)          # one-time wrapper-side fold/pad/cast

    out = attention_to_concept_mlp(x, fused)
    out = jax.block_until_ready(out)

    ref = reference_forward(x, params)
    assert out.shape == (BATCH, MLP_NUM_CONCEPTS)
    # bf16 weight streaming introduces ~1e-3..1e-2 level error vs the full-f32 reference.
    assert jnp.allclose(out, ref, atol=3e-2, rtol=3e-2), "mismatch vs reference"

    print("KERNEL_OK")
</pallas_src>

<mosaic_0001>
module attributes {stable_mosaic.version = 11 : i64} {
  func.func @mlp_kernel(%arg0: memref<8x640xf32, #tpu.memory_space<vmem>>, %arg1: memref<640x256xbf16, #tpu.memory_space<vmem>>, %arg2: memref<256x128xbf16, #tpu.memory_space<vmem>>, %arg3: memref<128x128xbf16, #tpu.memory_space<vmem>>, %arg4: memref<1x512xf32, #tpu.memory_space<vmem>>, %arg5: memref<8x128xf32, #tpu.memory_space<vmem>>) attributes {dimension_semantics = [], scalar_prefetch = 0 : i64, scratch_operands = 0 : i64, tpu.core_type = #tpu.core_type<tc>} {
    %c0 = arith.constant 0 : index
    %c0_0 = arith.constant 0 : index
    %0 = vector.load %arg0[%c0, %c0_0] : memref<8x640xf32, #tpu.memory_space<vmem>>, vector<8x640xf32>
    %c0_1 = arith.constant 0 : index
    %c0_2 = arith.constant 0 : index
    %1 = vector.load %arg1[%c0_1, %c0_2] : memref<640x256xbf16, #tpu.memory_space<vmem>>, vector<640x256xbf16>
    %2 = arith.extf %1 : vector<640x256xbf16> to vector<640x256xf32>
    %cst = arith.constant dense<0.000000e+00> : vector<8x256xf32>
    %3 = tpu.matmul %0, %2, %cst {dimension_numbers = #tpu.dot_dimension_numbers<[1], [0], [0], [1], [0, 0, 1, 1], [], []>} : vector<8x640xf32>, vector<640x256xf32>, vector<8x256xf32> -> vector<8x256xf32>
    %c0_3 = arith.constant 0 : index
    %c0_4 = arith.constant 0 : index
    %4 = vector.load %arg4[%c0_3, %c0_4] : memref<1x512xf32, #tpu.memory_space<vmem>>, vector<1x256xf32>
    %5 = vector.broadcast %4 : vector<1x256xf32> to vector<8x256xf32>
    %6 = arith.addf %3, %5 : vector<8x256xf32>
    %cst_5 = arith.constant 0.000000e+00 : f32
    %7 = vector.broadcast %cst_5 : f32 to vector<8x256xf32>
    %8 = arith.maximumf %6, %7 : vector<8x256xf32>
    %c0_6 = arith.constant 0 : index
    %c0_7 = arith.constant 0 : index
    %9 = vector.load %arg2[%c0_6, %c0_7] : memref<256x128xbf16, #tpu.memory_space<vmem>>, vector<256x128xbf16>
    %10 = arith.extf %9 : vector<256x128xbf16> to vector<256x128xf32>
    %cst_8 = arith.constant dense<0.000000e+00> : vector<8x128xf32>
    %11 = tpu.matmul %8, %10, %cst_8 {dimension_numbers = #tpu.dot_dimension_numbers<[1], [0], [0], [1], [0, 0, 1, 1], [], []>} : vector<8x256xf32>, vector<256x128xf32>, vector<8x128xf32> -> vector<8x128xf32>
    %c0_9 = arith.constant 0 : index
    %c256 = arith.constant 256 : index
    %12 = vector.load %arg4[%c0_9, %c256] : memref<1x512xf32, #tpu.memory_space<vmem>>, vector<1x128xf32>
    %13 = vector.broadcast %12 : vector<1x128xf32> to vector<8x128xf32>
    %14 = arith.addf %11, %13 : vector<8x128xf32>
    %cst_10 = arith.constant 0.000000e+00 : f32
    %15 = vector.broadcast %cst_10 : f32 to vector<8x128xf32>
    %16 = arith.maximumf %14, %15 : vector<8x128xf32>
    %c0_11 = arith.constant 0 : index
    %c0_12 = arith.constant 0 : index
    %17 = vector.load %arg3[%c0_11, %c0_12] : memref<128x128xbf16, #tpu.memory_space<vmem>>, vector<128x128xbf16>
    %18 = arith.extf %17 : vector<128x128xbf16> to vector<128x128xf32>
    %cst_13 = arith.constant dense<0.000000e+00> : vector<8x128xf32>
    %19 = tpu.matmul %16, %18, %cst_13 {dimension_numbers = #tpu.dot_dimension_numbers<[1], [0], [0], [1], [0, 0, 1, 1], [], []>} : vector<8x128xf32>, vector<128x128xf32>, vector<8x128xf32> -> vector<8x128xf32>
    %c0_14 = arith.constant 0 : index
    %c384 = arith.constant 384 : index
    %20 = vector.load %arg4[%c0_14, %c384] : memref<1x512xf32, #tpu.memory_space<vmem>>, vector<1x128xf32>
    %21 = vector.broadcast %20 : vector<1x128xf32> to vector<8x128xf32>
    %22 = arith.addf %19, %21 : vector<8x128xf32>
    %c0_15 = arith.constant 0 : index
    %c0_16 = arith.constant 0 : index
    %23 = vector.load %arg5[%c0_15, %c0_16] : memref<8x128xf32, #tpu.memory_space<vmem>>, vector<8x128xf32>
    tpu.vector_store %arg5[%c0_15, %c0_16], %22 {strides = array<i32>} : memref<8x128xf32, #tpu.memory_space<vmem>>, vector<8x128xf32>,
    return
  }
}

</mosaic_0001>

<bundles_post_ra>
// kernel: _run_fused.1
= control target key start
LH: loop header
LB: loop body
LE: loop exit
PB: predicated region body
PF: predicated region fallthrough
CT: control target
= control target key end

     0   :  { %10 = vsyncpa [#allocation3], 0  ;;  %s1185_s0 = inlined_call_operand.vmem [shape: f32[8,640], index: 0, kind: input, shape index: {}]   ;;  %s1186_s1 = inlined_call_operand.hbm [shape: bf16[640,256], index: 1, kind: input, shape index: {}]   ;;  %s1187_s2 = inlined_call_operand.hbm [shape: bf16[256,128], index: 2, kind: input, shape index: {}]   ;;  %s1188_s3 = inlined_call_operand.vmem [shape: bf16[128,128], index: 3, kind: input, shape index: {}]   ;;  %s1189_s4 = inlined_call_operand.vmem [shape: f32[1,512], index: 4, kind: input, shape index: {}]   ;;  %s1190_s5 = inlined_call_operand.hbm [shape: f32[8,128], index: 5, kind: output, shape index: {}]  }
   0x1   :  { %11 = vsyncpa [#allocation6], 0 }
   0x2   :  { %12 = vsyncpa [#allocation4], 0  ;;  %s1071_s18 = smov [#allocation2]  }
   0x3   :  { %s20_s19 = sshll.u32 %s1071_s18, 4  ;;  %s21_s19 = int_to_ptr.vmem [resolvable:$true] %s20_s19 }
   0x4   :  { %s1013_s20 = scalar_lea.vmem %s21_s19, 10240  ;;  %p1018_p1 = scmp.lt.s32.totalorder %s21_s19, %s21_s19 }
   0x5   :  { %p1014_p0 = scmp.ne.s32.totalorder %s21_s19, %s1013_s20  ;;  %p1019_p2 = scmp.lt.s32.totalorder %s1013_s20, %s1013_s20 }
   0x7   :  { %p1020_p3 = por %p1019_p2, %p1018_p1 }
   0x9   :  { %p1021_p4 = pnand %p1020_p3, %p1014_p0 }
   0xb   :  { %1024 = shalt.err (!%p1021_p4)
}
   0xc   :  { %s1072_s21 = smov 128   ;;  %s1073_s22 = smov 8  }
   0xd   :  { %26 = dma.hbm_to_vmem [thread:$0]  %s1186_s1, 10240, %s21_s19, [#allocation3], %s1072_s21, %s1072_s21, %s1073_s22  }
   0xe   :  { %s1074_s25 = smov [#allocation5]  }
   0xf   :  { %s32_s26 = sshll.u32 %s1074_s25, 4  ;;  %s33_s26 = int_to_ptr.vmem [resolvable:$true] %s32_s26 }
  0x10   :  { %s1033_s27 = scalar_lea.vmem %s33_s26, 2048  ;;  %p1038_p6 = scmp.lt.s32.totalorder %s33_s26, %s33_s26 }
  0x11   :  { %p1034_p5 = scmp.ne.s32.totalorder %s33_s26, %s1033_s27  ;;  %p1039_p7 = scmp.lt.s32.totalorder %s1033_s27, %s1033_s27 }
  0x13   :  { %p1040_p8 = por %p1039_p7, %p1038_p6 }
  0x15   :  { %p1041_p9 = pnand %p1040_p8, %p1034_p5 }
  0x17   :  { %1044 = shalt.err (!%p1041_p9)
}
  0x18   :  { %s1075_s28 = smov 64   ;;  %s1076_s29 = smov 4  }
  0x19   :  { %38 = dma.hbm_to_vmem [thread:$0]  %s1187_s2, 2048, %s33_s26, [#allocation6], %s1075_s28, %s1075_s28, %s1076_s29  }
  0x1a   :  { %1065 = dma.done.wait [#allocation3], 10240  }
  0x1b   :  { %1066 = vsyncadd [#allocation3], 4294957056 }
  0x1c   :  { %1067 = dma.done.wait [#allocation6], 2048  }
  0x1d   :  { %1068 = vsyncadd [#allocation6], 4294965248  ;;  %v69_v0 = vld [vmem:[#allocation2 + $0x78] sm:$0xff]  ;;  %v68_v1 = vld [vmem:[#allocation2 + $0x70] sm:$0xff]  ;;  %vm1078_vm0 = vmmov 0   ;;  %s1079_s8 = smov [#allocation7]  }
  0x1e   :  { %v101_v2 = vld [vmem:[#allocation2 + $0x178] sm:$0xff]  ;;  %v165_v3 = vunpack.c.h.bf16 %v69_v0  ;;  %v164_v4 = vunpack.c.l.bf16 %v69_v0  ;;  %v163_v5 = vunpack.c.h.bf16 %v68_v1  ;;  %v67_v7 = vld [vmem:[#allocation2 + $0x68] sm:$0xff]  ;;  %v100_v8 = vld [vmem:[#allocation2 + $0x170] sm:$0xff]  ;;  %v162_v9 = vunpack.c.l.bf16 %v68_v1  ;;  %s779_s9 = sshll.u32 %s1079_s8, 4  ;;  %s780_s9 = int_to_ptr.vmem [resolvable:$true] %s779_s9 }
  0x1f   :  { %v229_v6 = vunpack.c.h.bf16 %v101_v2  ;;  %v228_v10 = vunpack.c.l.bf16 %v101_v2  ;;  %v227_v11 = vunpack.c.h.bf16 %v100_v8  ;;  %v66_v12 = vld [vmem:[#allocation2 + $0x60] sm:$0xff]  ;;  %v99_v13 = vld [vmem:[#allocation2 + $0x168] sm:$0xff]  ;;  %v161_v15 = vunpack.c.h.bf16 %v67_v7  ;;  %v65_v20 = vld [vmem:[#allocation2 + $0x58] sm:$0xff]  ;;  %s1045_s10 = scalar_lea.vmem %s780_s9, 128  ;;  %p1050_p11 = scmp.lt.s32.totalorder %s780_s9, %s780_s9 }
  0x20   :  { %v98_v14 = vld [vmem:[#allocation2 + $0x160] sm:$0xff]  ;;  %306 = vmatprep.subr.mxu0 %v165_v3  ;;  %v226_v16 = vunpack.c.l.bf16 %v100_v8  ;;  %v225_v17 = vunpack.c.h.bf16 %v99_v13  ;;  %v160_v18 = vunpack.c.l.bf16 %v67_v7  ;;  %v224_v19 = vunpack.c.l.bf16 %v99_v13  ;;  %v97_v21 = vld [vmem:[#allocation2 + $0x158] sm:$0xff]  ;;  %v64_v26 = vld [vmem:[#allocation2 + $0x50] sm:$0xff]  ;;  %p1046_p10 = scmp.ne.s32.totalorder %s780_s9, %s1045_s10  ;;  %p1051_p12 = scmp.lt.s32.totalorder %s1045_s10, %s1045_s10 }
  0x21   :  { %377 = vmatprep.subr.mxu1 %v229_v6  ;;  %307 = vmatpush1.msra.mxu0 %v164_v4  ;;  %v159_v22 = vunpack.c.h.bf16 %v66_v12  ;;  %v223_v23 = vunpack.c.h.bf16 %v98_v14  ;;  %v158_v24 = vunpack.c.l.bf16 %v66_v12  ;;  %v222_v25 = vunpack.c.l.bf16 %v98_v14  ;;  %v96_v27 = vld [vmem:[#allocation2 + $0x150] sm:$0xff]  ;;  %v63_v32 = vld [vmem:[#allocation2 + $0x48] sm:$0xff]  ;;  %v62_v38 = vld [vmem:[#allocation2 + $0x40] sm:$0xff] }
  0x22   :  { %378 = vmatpush1.msra.mxu1 %v228_v10  ;;  %308 = vmatprep.subr.mxu0 %v163_v5  ;;  %v157_v28 = vunpack.c.h.bf16 %v65_v20  ;;  %v221_v29 = vunpack.c.h.bf16 %v97_v21  ;;  %v156_v30 = vunpack.c.l.bf16 %v65_v20  ;;  %v220_v31 = vunpack.c.l.bf16 %v97_v21  ;;  %v95_v33 = vld [vmem:[#allocation2 + $0x148] sm:$0xff]  ;;  %v94_v39 = vld [vmem:[#allocation2 + $0x140] sm:$0xff]  ;;  %v61_v44 = vld [vmem:[#allocation2 + $0x38] sm:$0xff]  ;;  %p1052_p13 = por %p1051_p12, %p1050_p11 }
  0x23   :  { %379 = vmatprep.subr.mxu1 %v227_v11  ;;  %309 = vmatpush1.msra.mxu0 %v162_v9  ;;  %v155_v34 = vunpack.c.h.bf16 %v64_v26  ;;  %v219_v35 = vunpack.c.h.bf16 %v96_v27  ;;  %v154_v36 = vunpack.c.l.bf16 %v64_v26  ;;  %v218_v37 = vunpack.c.l.bf16 %v96_v27  ;;  %v93_v45 = vld [vmem:[#allocation2 + $0x138] sm:$0xff]  ;;  %v60_v50 = vld [vmem:[#allocation2 + $0x30] sm:$0xff]  ;;  %v59_v56 = vld [vmem:[#allocation2 + $0x28] sm:$0xff] }
  0x24   :  { %380 = vmatpush1.msra.mxu1 %v226_v16  ;;  %310 = vmatprep.subr.mxu0 %v161_v15  ;;  %v153_v40 = vunpack.c.h.bf16 %v63_v32  ;;  %v217_v41 = vunpack.c.h.bf16 %v95_v33  ;;  %v152_v42 = vunpack.c.l.bf16 %v63_v32  ;;  %v216_v43 = vunpack.c.l.bf16 %v95_v33  ;;  %v92_v51 = vld [vmem:[#allocation2 + $0x130] sm:$0xff]  ;;  %v91_v57 = vld [vmem:[#allocation2 + $0x128] sm:$0xff]  ;;  %v58_v62 = vld [vmem:[#allocation2 + $0x20] sm:$0xff]  ;;  %p1053_p0 = pnand %p1052_p13, %p1046_p10 }
  0x25   :  { %381 = vmatprep.subr.mxu1 %v225_v17  ;;  %311 = vmatpush1.msra.mxu0 %v160_v18  ;;  %v151_v46 = vunpack.c.h.bf16 %v62_v38  ;;  %v215_v47 = vunpack.c.h.bf16 %v94_v39  ;;  %v150_v48 = vunpack.c.l.bf16 %v62_v38  ;;  %v214_v49 = vunpack.c.l.bf16 %v94_v39  ;;  %v90_v63 = vld [vmem:[#allocation2 + $0x120] sm:$0xff]  ;;  %v57_v4 = vld [vmem:[#allocation2 + $0x18] sm:$0xff]  ;;  %v56_v10 = vld [vmem:[#allocation2 + $0x10] sm:$0xff] }
  0x26   :  { %382 = vmatpush1.msra.mxu1 %v224_v19  ;;  %312 = vmatprep.subr.mxu0 %v159_v22  ;;  %v149_v52 = vunpack.c.h.bf16 %v61_v44  ;;  %v213_v53 = vunpack.c.h.bf16 %v93_v45  ;;  %v148_v54 = vunpack.c.l.bf16 %v61_v44  ;;  %v212_v55 = vunpack.c.l.bf16 %v93_v45  ;;  %v89_v5 = vld [vmem:[#allocation2 + $0x118] sm:$0xff]  ;;  %v88_v11 = vld [vmem:[#allocation2 + $0x110] sm:$0xff]  ;;  %v55_v16 = vld [vmem:[#allocation2 + $0x8] sm:$0xff] }
  0x27   :  { %383 = vmatprep.subr.mxu1 %v223_v23  ;;  %313 = vmatpush1.msra.mxu0 %v158_v24  ;;  %v147_v58 = vunpack.c.h.bf16 %v60_v50  ;;  %v211_v59 = vunpack.c.h.bf16 %v92_v51  ;;  %v146_v60 = vunpack.c.l.bf16 %v60_v50  ;;  %v210_v61 = vunpack.c.l.bf16 %v92_v51  ;;  %v87_v17 = vld [vmem:[#allocation2 + $0x108] sm:$0xff]  ;;  %v54_v22 = vld [vmem:[#allocation2] sm:$0xff] }
  0x28   :  { %384 = vmatpush1.msra.mxu1 %v222_v25  ;;  %314 = vmatprep.subr.mxu0 %v157_v28  ;;  %v145_v0 = vunpack.c.h.bf16 %v59_v56  ;;  %v209_v1 = vunpack.c.h.bf16 %v91_v57  ;;  %v144_v2 = vunpack.c.l.bf16 %v59_v56  ;;  %v208_v3 = vunpack.c.l.bf16 %v91_v57  ;;  %v86_v23 = vld [vmem:[#allocation2 + $0x100] sm:$0xff]  ;;  %v85_v28 = vld [vmem:[#allocation2 + $0xf8] sm:$0xff] }
  0x29   :  { %385 = vmatprep.subr.mxu1 %v221_v29  ;;  %315 = vmatpush1.msra.mxu0 %v156_v30  ;;  %v143_v6 = vunpack.c.h.bf16 %v58_v62  ;;  %v207_v7 = vunpack.c.h.bf16 %v90_v63  ;;  %v142_v8 = vunpack.c.l.bf16 %v58_v62  ;;  %v206_v9 = vunpack.c.l.bf16 %v90_v63  ;;  %v117_v29 = vld [vmem:[#allocation2 + $0x1f8] sm:$0xff] }
  0x2a   :  { %386 = vmatpush1.msra.mxu1 %v220_v31  ;;  %316 = vmatprep.subr.mxu0 %v155_v34  ;;  %v141_v12 = vunpack.c.h.bf16 %v57_v4  ;;  %v205_v13 = vunpack.c.h.bf16 %v89_v5  ;;  %v140_v14 = vunpack.c.l.bf16 %v57_v4  ;;  %v204_v15 = vunpack.c.l.bf16 %v89_v5  ;;  %v84_v34 = vld [vmem:[#allocation2 + $0xf0] sm:$0xff] }
  0x2b   :  { %387 = vmatprep.subr.mxu1 %v219_v35  ;;  %317 = vmatpush1.msra.mxu0 %v154_v36  ;;  %v139_v18 = vunpack.c.h.bf16 %v56_v10  ;;  %v203_v19 = vunpack.c.h.bf16 %v88_v11  ;;  %v138_v20 = vunpack.c.l.bf16 %v56_v10  ;;  %v202_v21 = vunpack.c.l.bf16 %v88_v11  ;;  %v116_v35 = vld [vmem:[#allocation2 + $0x1f0] sm:$0xff] }
  0x2c   :  { %388 = vmatpush1.msra.mxu1 %v218_v37  ;;  %318 = vmatprep.subr.mxu0 %v153_v40  ;;  %v137_v24 = vunpack.c.h.bf16 %v55_v16  ;;  %v201_v25 = vunpack.c.h.bf16 %v87_v17  ;;  %v136_v26 = vunpack.c.l.bf16 %v55_v16  ;;  %v200_v27 = vunpack.c.l.bf16 %v87_v17  ;;  %v83_v40 = vld [vmem:[#allocation2 + $0xe8] sm:$0xff] }
  0x2d   :  { %389 = vmatprep.subr.mxu1 %v217_v41  ;;  %319 = vmatpush1.msra.mxu0 %v152_v42  ;;  %v135_v30 = vunpack.c.h.bf16 %v54_v22  ;;  %v199_v31 = vunpack.c.h.bf16 %v86_v23  ;;  %v134_v32 = vunpack.c.l.bf16 %v54_v22  ;;  %v198_v33 = vunpack.c.l.bf16 %v86_v23  ;;  %v115_v41 = vld [vmem:[#allocation2 + $0x1e8] sm:$0xff] }
  0x2e   :  { %390 = vmatpush1.msra.mxu1 %v216_v43  ;;  %320 = vmatprep.subr.mxu0 %v151_v46  ;;  %v197_v36 = vunpack.c.h.bf16 %v85_v28  ;;  %v261_v37 = vunpack.c.h.bf16 %v117_v29  ;;  %v196_v38 = vunpack.c.l.bf16 %v85_v28  ;;  %v260_v39 = vunpack.c.l.bf16 %v117_v29  ;;  %v82_v46 = vld [vmem:[#allocation2 + $0xe0] sm:$0xff] }
  0x2f   :  { %391 = vmatprep.subr.mxu1 %v215_v47  ;;  %321 = vmatpush1.msra.mxu0 %v150_v48  ;;  %v195_v42 = vunpack.c.h.bf16 %v84_v34  ;;  %v259_v43 = vunpack.c.h.bf16 %v116_v35  ;;  %v194_v44 = vunpack.c.l.bf16 %v84_v34  ;;  %v258_v45 = vunpack.c.l.bf16 %v116_v35  ;;  %v114_v47 = vld [vmem:[#allocation2 + $0x1e0] sm:$0xff] }
  0x30   :  { %392 = vmatpush1.msra.mxu1 %v214_v49  ;;  %322 = vmatprep.subr.mxu0 %v149_v52  ;;  %v193_v48 = vunpack.c.h.bf16 %v83_v40  ;;  %v257_v49 = vunpack.c.h.bf16 %v115_v41  ;;  %v192_v50 = vunpack.c.l.bf16 %v83_v40  ;;  %v256_v51 = vunpack.c.l.bf16 %v115_v41  ;;  %v81_v52 = vld [vmem:[#allocation2 + $0xd8] sm:$0xff] }
  0x31   :  { %393 = vmatprep.subr.mxu1 %v213_v53  ;;  %323 = vmatpush1.msra.mxu0 %v148_v54  ;;  %v113_v53 = vld [vmem:[#allocation2 + $0x1d8] sm:$0xff]  ;;  %v191_v54 = vunpack.c.h.bf16 %v82_v46  ;;  %v190_v56 = vunpack.c.l.bf16 %v82_v46  ;;  %v254_v57 = vunpack.c.l.bf16 %v114_v47  ;;  %v188_v62 = vunpack.c.l.bf16 %v81_v52 }
  0x32   :  { %394 = vmatpush1.msra.mxu1 %v212_v55  ;;  %324 = vmatprep.subr.mxu0 %v147_v58  ;;  %v255_v55 = vunpack.c.h.bf16 %v114_v47  ;;  %v80_v58 = vld [vmem:[#allocation2 + $0xd0] sm:$0xff]  ;;  %v252_v63 = vunpack.c.l.bf16 %v113_v53 }
  0x33   :  { %395 = vmatprep.subr.mxu1 %v211_v59  ;;  %325 = vmatpush1.msra.mxu0 %v146_v60  ;;  %v112_v59 = vld [vmem:[#allocation2 + $0x1d0] sm:$0xff]  ;;  %v189_v60 = vunpack.c.h.bf16 %v81_v52  ;;  %v186_v4 = vunpack.c.l.bf16 %v80_v58 }
  0x34   :  { %396 = vmatpush1.msra.mxu1 %v210_v61  ;;  %326 = vmatprep.subr.mxu0 %v145_v0  ;;  %v253_v61 = vunpack.c.h.bf16 %v113_v53  ;;  %v79_v0 = vld [vmem:[#allocation2 + $0xc8] sm:$0xff]  ;;  %v250_v5 = vunpack.c.l.bf16 %v112_v59 }
  0x35   :  { %397 = vmatprep.subr.mxu1 %v209_v1  ;;  %327 = vmatpush1.msra.mxu0 %v144_v2  ;;  %v111_v1 = vld [vmem:[#allocation2 + $0x1c8] sm:$0xff]  ;;  %v187_v2 = vunpack.c.h.bf16 %v80_v58  ;;  %v184_v10 = vunpack.c.l.bf16 %v79_v0 }
  0x36   :  { %398 = vmatpush1.msra.mxu1 %v208_v3  ;;  %328 = vmatprep.subr.mxu0 %v143_v6  ;;  %v251_v3 = vunpack.c.h.bf16 %v112_v59  ;;  %v78_v6 = vld [vmem:[#allocation2 + $0xc0] sm:$0xff]  ;;  %v248_v11 = vunpack.c.l.bf16 %v111_v1  ;;  %v133_v59 = vld [vmem:[#allocation2 + $0x278] sm:$0xff] }
  0x37   :  { %399 = vmatprep.subr.mxu1 %v207_v7  ;;  %329 = vmatpush1.msra.mxu0 %v142_v8  ;;  %v110_v7 = vld [vmem:[#allocation2 + $0x1c0] sm:$0xff]  ;;  %v185_v8 = vunpack.c.h.bf16 %v79_v0  ;;  %v182_v16 = vunpack.c.l.bf16 %v78_v6 }
  0x38   :  { %400 = vmatpush1.msra.mxu1 %v206_v9  ;;  %330 = vmatprep.subr.mxu0 %v141_v12  ;;  %v249_v9 = vunpack.c.h.bf16 %v111_v1  ;;  %v77_v12 = vld [vmem:[#allocation2 + $0xb8] sm:$0xff]  ;;  %v246_v17 = vunpack.c.l.bf16 %v110_v7  ;;  %v293_v1 = vunpack.c.h.bf16 %v133_v59 }
  0x39   :  { %401 = vmatprep.subr.mxu1 %v205_v13  ;;  %331 = vmatpush1.msra.mxu0 %v140_v14  ;;  %v109_v13 = vld [vmem:[#allocation2 + $0x1b8] sm:$0xff]  ;;  %v183_v14 = vunpack.c.h.bf16 %v78_v6  ;;  %v180_v22 = vunpack.c.l.bf16 %v77_v12 }
  0x3a   :  { %402 = vmatpush1.msra.mxu1 %v204_v15  ;;  %332 = vmatprep.subr.mxu0 %v139_v18  ;;  %v247_v15 = vunpack.c.h.bf16 %v110_v7  ;;  %v76_v18 = vld [vmem:[#allocation2 + $0xb0] sm:$0xff]  ;;  %v244_v23 = vunpack.c.l.bf16 %v109_v13  ;;  %v52_v6 = vld [vmem:[%s1185_s0 + $0x18] sm:$0xff]  ;;  %v131_v7 = vld [vmem:[#allocation2 + $0x268] sm:$0xff] }
  0x3b   :  { %403 = vmatprep.subr.mxu1 %v203_v19  ;;  %333 = vmatpush1.msra.mxu0 %v138_v20  ;;  %v108_v19 = vld [vmem:[#allocation2 + $0x1b0] sm:$0xff]  ;;  %v181_v20 = vunpack.c.h.bf16 %v77_v12  ;;  %v178_v28 = vunpack.c.l.bf16 %v76_v18  ;;  %v289_v12 = vunpack.c.h.bf16 %v131_v7 }
  0x3c   :  { %404 = vmatpush1.msra.mxu1 %v202_v21  ;;  %334 = vmatprep.subr.mxu0 %v137_v24  ;;  %v245_v21 = vunpack.c.h.bf16 %v109_v13  ;;  %v75_v24 = vld [vmem:[#allocation2 + $0xa8] sm:$0xff]  ;;  %v242_v29 = vunpack.c.l.bf16 %v108_v19  ;;  %v288_v13 = vunpack.c.l.bf16 %v131_v7 }
  0x3d   :  { %405 = vmatprep.subr.mxu1 %v201_v25  ;;  %335 = vmatpush1.msra.mxu0 %v136_v26  ;;  %v107_v25 = vld [vmem:[#allocation2 + $0x1a8] sm:$0xff]  ;;  %v179_v26 = vunpack.c.h.bf16 %v76_v18  ;;  %v176_v34 = vunpack.c.l.bf16 %v75_v24  ;;  %v128_v18 = vld [vmem:[#allocation2 + $0x250] sm:$0xff] }
  0x3e   :  { %406 = vmatpush1.msra.mxu1 %v200_v27  ;;  %336 = vmatprep.subr.mxu0 %v135_v30  ;;  %v243_v27 = vunpack.c.h.bf16 %v108_v19  ;;  %v74_v30 = vld [vmem:[#allocation2 + $0xa0] sm:$0xff]  ;;  %v240_v35 = vunpack.c.l.bf16 %v107_v25 }
  0x3f   :  { %407 = vmatprep.subr.mxu1 %v199_v31  ;;  %337 = vmatpush1.msra.mxu0 %v134_v32  ;;  %v106_v31 = vld [vmem:[#allocation2 + $0x1a0] sm:$0xff]  ;;  %v177_v32 = vunpack.c.h.bf16 %v75_v24  ;;  %v174_v40 = vunpack.c.l.bf16 %v74_v30 }
  0x40   :  { %408 = vmatpush1.msra.mxu1 %v198_v33  ;;  %338 = vmatprep.subr.mxu0 %v197_v36  ;;  %v241_v33 = vunpack.c.h.bf16 %v107_v25  ;;  %v73_v36 = vld [vmem:[#allocation2 + $0x98] sm:$0xff]  ;;  %v238_v41 = vunpack.c.l.bf16 %v106_v31  ;;  %v126_v24 = vld [vmem:[#allocation2 + $0x240] sm:$0xff] }
  0x41   :  { %409 = vmatprep.subr.mxu1 %v261_v37  ;;  %339 = vmatpush2.msra.mxu0 %v196_v38  ;;  %v105_v37 = vld [vmem:[#allocation2 + $0x198] sm:$0xff]  ;;  %v175_v38 = vunpack.c.h.bf16 %v74_v30  ;;  %v172_v46 = vunpack.c.l.bf16 %v73_v36  ;;  %v124_v30 = vld [vmem:[#allocation2 + $0x230] sm:$0xff] }
  0x42   :  { %410 = vmatpush2.msra.mxu1 %v260_v39  ;;  %340 = vmatprep.subr.mxu0 %v195_v42  ;;  %v239_v39 = vunpack.c.h.bf16 %v106_v31  ;;  %v72_v42 = vld [vmem:[#allocation2 + $0x90] sm:$0xff]  ;;  %v236_v47 = vunpack.c.l.bf16 %v105_v37 }
  0x43   :  { %411 = vmatprep.subr.mxu1 %v259_v43  ;;  %341 = vmatpush2.msra.mxu0 %v194_v44  ;;  %v104_v43 = vld [vmem:[#allocation2 + $0x190] sm:$0xff]  ;;  %v173_v44 = vunpack.c.h.bf16 %v73_v36  ;;  %v170_v52 = vunpack.c.l.bf16 %v72_v42  ;;  %v122_v36 = vld [vmem:[#allocation2 + $0x220] sm:$0xff] }
  0x44   :  { %412 = vmatpush2.msra.mxu1 %v258_v45  ;;  %342 = vmatprep.subr.mxu0 %v193_v48  ;;  %v237_v45 = vunpack.c.h.bf16 %v105_v37  ;;  %v71_v48 = vld [vmem:[#allocation2 + $0x88] sm:$0xff]  ;;  %v234_v53 = vunpack.c.l.bf16 %v104_v43 }
  0x45   :  { %413 = vmatprep.subr.mxu1 %v257_v49  ;;  %343 = vmatpush2.msra.mxu0 %v192_v50  ;;  %v103_v49 = vld [vmem:[#allocation2 + $0x188] sm:$0xff]  ;;  %v171_v50 = vunpack.c.h.bf16 %v72_v42  ;;  %v168_v58 = vunpack.c.l.bf16 %v71_v48  ;;  %v120_v42 = vld [vmem:[#allocation2 + $0x210] sm:$0xff] }
  0x46   :  { %414 = vmatpush2.msra.mxu1 %v256_v51  ;;  %344 = vmatprep.subr.mxu0 %v191_v54  ;;  %v235_v51 = vunpack.c.h.bf16 %v104_v43  ;;  %v70_v54 = vld [vmem:[#allocation2 + $0x80] sm:$0xff] }
  0x47   :  { %415 = vmatprep.subr.mxu1 %v255_v55  ;;  %345 = vmatpush2.msra.mxu0 %v190_v56  ;;  %v169_v55 = vunpack.c.h.bf16 %v71_v48  ;;  %v233_v56 = vunpack.c.h.bf16 %v103_v49  ;;  %v118_v48 = vld [vmem:[#allocation2 + $0x200] sm:$0xff] }
  0x48   :  { %416 = vmatpush2.msra.mxu1 %v254_v57  ;;  %346 = vmatprep.subr.mxu0 %v189_v60  ;;  %v102_v57 = vld [vmem:[#allocation2 + $0x180] sm:$0xff]  ;;  %v167_v60 = vunpack.c.h.bf16 %v70_v54 }
  0x49   :  { %417 = vmatprep.subr.mxu1 %v253_v61  ;;  %347 = vmatpush2.msra.mxu0 %v188_v62  ;;  %v50_v61 = vld [vmem:[%s1185_s0 + $0x8] sm:$0xff]  ;;  %v232_v62 = vunpack.c.l.bf16 %v103_v49  ;;  %v231_v0 = vunpack.c.h.bf16 %v102_v57 }
  0x4a   :  { %418 = vmatpush2.msra.mxu1 %v252_v63  ;;  %348 = vmatprep.subr.mxu0 %v187_v2  ;;  %v166_v63 = vunpack.c.l.bf16 %v70_v54  ;;  %v132_v2 = vld [vmem:[#allocation2 + $0x270] sm:$0xff]  ;;  %v901_v54 = vld [vmem:[#allocation5 + $0x78] sm:$0xff]  }
  0x4b   :  { %419 = vmatprep.subr.mxu1 %v251_v3  ;;  %349 = vmatpush2.msra.mxu0 %v186_v4  ;;  %v49_v3 = vld [vmem:[%s1185_s0] sm:$0xff]  ;;  %v230_v4 = vunpack.c.l.bf16 %v102_v57  ;;  %v854_v57 = vunpack.c.h.bf16 %v901_v54 }
  0x4c   :  { %420 = vmatpush2.msra.mxu1 %v250_v5  ;;  %350 = vmatprep.subr.mxu0 %v185_v8  ;;  %v292_v5 = vunpack.c.l.bf16 %v133_v59  ;;  %v51_v8 = vld [vmem:[%s1185_s0 + $0x10] sm:$0xff]  ;;  %v853_v59 = vunpack.c.l.bf16 %v901_v54 }
  0x4d   :  { %421 = vmatprep.subr.mxu1 %v249_v9  ;;  %351 = vmatpush2.msra.mxu0 %v184_v10  ;;  %v291_v9 = vunpack.c.h.bf16 %v132_v2  ;;  %v290_v10 = vunpack.c.l.bf16 %v132_v2  ;;  %v891_v2 = vld [vmem:[#allocation5 + $0x28] sm:$0xff]  }
  0x4e   :  { %422 = vmatpush2.msra.mxu1 %v248_v11  ;;  %352 = vmatprep.subr.mxu0 %v183_v14  ;;  %v130_v11 = vld [vmem:[#allocation2 + $0x260] sm:$0xff]  ;;  %v129_v14 = vld [vmem:[#allocation2 + $0x258] sm:$0xff] }
  0x4f   :  { %423 = vmatprep.subr.mxu1 %v247_v15  ;;  %353 = vmatpush2.msra.mxu0 %v182_v16  ;;  %v287_v15 = vunpack.c.h.bf16 %v130_v11  ;;  %v1077_v16 = vmov 0.0   ;;  %v285_v19 = vunpack.c.h.bf16 %v129_v14 }
  0x50   :  { %424 = vmatpush2.msra.mxu1 %v246_v17  ;;  %354 = vmatprep.subr.mxu0 %v181_v20  ;;  %v286_v17 = vunpack.c.l.bf16 %v130_v11  ;;  %v284_v20 = vunpack.c.l.bf16 %v129_v14  ;;  %v889_v14 = vld [vmem:[#allocation5 + $0x18] sm:$0xff]  }
  0x51   :  { %425 = vmatprep.subr.mxu1 %v245_v21  ;;  %355 = vmatpush2.msra.mxu0 %v180_v22  ;;  %v127_v21 = vld [vmem:[#allocation2 + $0x248] sm:$0xff]  ;;  %v283_v22 = vunpack.c.h.bf16 %v128_v18 }
  0x52   :  { %426 = vmatpush2.msra.mxu1 %v244_v23  ;;  %356 = vmatprep.subr.mxu0 %v179_v26  ;;  %v282_v23 = vunpack.c.l.bf16 %v128_v18  ;;  %v281_v25 = vunpack.c.h.bf16 %v127_v21  ;;  %v280_v26 = vunpack.c.l.bf16 %v127_v21  ;;  %v806_v18 = vunpack.c.h.bf16 %v889_v14  ;;  %v888_v21 = vld [vmem:[#allocation5 + $0x10] sm:$0xff]  }
  0x53   :  { %427 = vmatprep.subr.mxu1 %v243_v27  ;;  %357 = vmatpush2.msra.mxu0 %v178_v28  ;;  %v125_v27 = vld [vmem:[#allocation2 + $0x238] sm:$0xff]  ;;  %v279_v28 = vunpack.c.h.bf16 %v126_v24 }
  0x54   :  { %428 = vmatpush2.msra.mxu1 %v242_v29  ;;  %358 = vmatprep.subr.mxu0 %v177_v32  ;;  %v278_v29 = vunpack.c.l.bf16 %v126_v24  ;;  %v277_v31 = vunpack.c.h.bf16 %v125_v27  ;;  %v276_v32 = vunpack.c.l.bf16 %v125_v27  ;;  %v802_v24 = vunpack.c.h.bf16 %v888_v21  ;;  %v895_v27 = vld [vmem:[#allocation5 + $0x48] sm:$0xff]  }
  0x55   :  { %429 = vmatprep.subr.mxu1 %v241_v33  ;;  %359 = vmatpush2.msra.mxu0 %v176_v34  ;;  %v123_v33 = vld [vmem:[#allocation2 + $0x228] sm:$0xff]  ;;  %v275_v34 = vunpack.c.h.bf16 %v124_v30 }
  0x56   :  { %430 = vmatpush2.msra.mxu1 %v240_v35  ;;  %360 = vmatprep.subr.mxu0 %v175_v38  ;;  %v274_v35 = vunpack.c.l.bf16 %v124_v30  ;;  %v273_v37 = vunpack.c.h.bf16 %v123_v33  ;;  %v272_v38 = vunpack.c.l.bf16 %v123_v33  ;;  %v894_v33 = vld [vmem:[#allocation5 + $0x40] sm:$0xff]  }
  0x57   :  { %431 = vmatprep.subr.mxu1 %v239_v39  ;;  %361 = vmatpush2.msra.mxu0 %v174_v40  ;;  %v121_v39 = vld [vmem:[#allocation2 + $0x218] sm:$0xff]  ;;  %v271_v40 = vunpack.c.h.bf16 %v122_v36 }
  0x58   :  { %432 = vmatpush2.msra.mxu1 %v238_v41  ;;  %362 = vmatprep.subr.mxu0 %v173_v44  ;;  %v270_v41 = vunpack.c.l.bf16 %v122_v36  ;;  %v269_v43 = vunpack.c.h.bf16 %v121_v39  ;;  %v268_v44 = vunpack.c.l.bf16 %v121_v39  ;;  %v908_v39 = vld [vmem:[%s1188_s3 + $0x38] sm:$0xff]  }
  0x59   :  { %433 = vmatprep.subr.mxu1 %v237_v45  ;;  %363 = vmatpush2.msra.mxu0 %v172_v46  ;;  %v119_v45 = vld [vmem:[#allocation2 + $0x208] sm:$0xff]  ;;  %v267_v46 = vunpack.c.h.bf16 %v120_v42 }
  0x5a   :  { %434 = vmatpush2.msra.mxu1 %v236_v47  ;;  %364 = vmatprep.subr.mxu0 %v171_v50  ;;  %v266_v47 = vunpack.c.l.bf16 %v120_v42  ;;  %v265_v49 = vunpack.c.h.bf16 %v119_v45  ;;  %v264_v50 = vunpack.c.l.bf16 %v119_v45  ;;  %v885_v42 = vunpack.c.l.bf16 %v908_v39 }
  0x5b   :  { %435 = vmatprep.subr.mxu1 %v235_v51  ;;  %365 = vmatpush2.msra.mxu0 %v170_v52  ;;  %v263_v51 = vunpack.c.h.bf16 %v118_v48  ;;  %v262_v52 = vunpack.c.l.bf16 %v118_v48 }
  0x5c   :  { %436 = vmatpush2.msra.mxu1 %v234_v53  ;;  %366 = vmatprep.subr.mxu0 %v169_v55  ;;  %v53_v53 = vld [vmem:[%s1185_s0 + $0x20] sm:$0xff]  ;;  %v893_v55 = vld [vmem:[#allocation5 + $0x38] sm:$0xff]  }
  0x5d   :  { %437 = vmatprep.subr.mxu1 %v233_v56  ;;  %367 = vmatpush2.msra.mxu0 %v168_v58  ;;  %v900_v56 = vld [vmem:[#allocation5 + $0x70] sm:$0xff]   ;;  %v822_v58 = vunpack.c.h.bf16 %v893_v55 }
  0x5e   :  { %370 = vmatprep.mubr.f32.mxu0 %v50_v61  ;;  %368 = vmatprep.subr.mxu0 %v167_v60  ;;  %v892_v60 = vld [vmem:[#allocation5 + $0x30] sm:$0xff]   ;;  %v821_v61 = vunpack.c.l.bf16 %v893_v55 }
  0x5f   :  { %438 = vmatpush2.msra.mxu1 %v232_v62  ;;  %369 = vmatpush2.msra.mxu0 %v166_v63  ;;  %v850_v62 = vunpack.c.h.bf16 %v900_v56  ;;  %v818_v63 = vunpack.c.h.bf16 %v892_v60 }
  0x60   :  { %439 = vmatprep.subr.mxu1 %v231_v0  ;;  %371 = vmatmul.mubr.f32.vlgmr.msra.gmra.mxu0 %v49_v3  ;;  %v899_v0 = vld [vmem:[#allocation5 + $0x68] sm:$0xff]   ;;  %v817_v3 = vunpack.c.l.bf16 %v892_v60 }
  0x61   :  { %448 = vmatprep.subr.mxu0 %v293_v1  ;;  %440 = vmatpush2.msra.mxu1 %v230_v4  ;;  %v849_v1 = vunpack.c.l.bf16 %v900_v56  ;;  %v846_v4 = vunpack.c.h.bf16 %v899_v0  ;;  %v845_v7 = vunpack.c.l.bf16 %v899_v0  ;;  %v296_v56 = vlaneseq }
  0x62   :  { %441 = vmatprep.mubr.f32.mxu1 %v52_v6  ;;  %449 = vmatpush1.msra.mxu0 %v292_v5  ;;  %v814_v5 = vunpack.c.h.bf16 %v891_v2  ;;  %v898_v6 = vld [vmem:[#allocation5 + $0x60] sm:$0xff]  }
  0x63   :  { %442 = vmatmul.mubr.f32.vlgmr.msra.gmra.mxu1 %v51_v8  ;;  %450 = vmatprep.subr.mxu0 %v291_v9  ;;  %v890_v8 = vld [vmem:[#allocation5 + $0x20] sm:$0xff]   ;;  %v813_v9 = vunpack.c.l.bf16 %v891_v2 }
  0x64   :  { %512 = vmatprep.mubr.f32.mxu0 %v1077_v16  ;;  %451 = vmatpush1.msra.mxu0 %v290_v10  ;;  %v842_v10 = vunpack.c.h.bf16 %v898_v6  ;;  %v810_v11 = vunpack.c.h.bf16 %v890_v8 }
  0x65   :  { %452 = vmatprep.subr.mxu0 %v289_v12  ;;  %909 = vmatprep.subr.mxu1 %v854_v57  ;;  %v897_v12 = vld [vmem:[#allocation5 + $0x58] sm:$0xff]   ;;  %v297_v57 = vshrl.u32 %v296_v56, 7 }
  0x66   :  { %453 = vmatpush1.msra.mxu0 %v288_v13  ;;  %910 = vmatpush3.msra.mxu1 %v822_v58  ;;  %v841_v13 = vunpack.c.l.bf16 %v898_v6 }
  0x67   :  { %454 = vmatprep.subr.mxu0 %v287_v15  ;;  %911 = vmatprep.subr.mxu1 %v853_v59  ;;  %v809_v15 = vunpack.c.l.bf16 %v890_v8  ;;  %v298_v58 = vsub.s32 0, %v297_v57  ;;  %v294_v59 = vld [vmem:[%s1189_s4] sm:$0x3]  ;;  %v302_v60 = vsub.s32 1, %v297_v57 }
  0x68   :  { %455 = vmatpush1.msra.mxu0 %v286_v17  ;;  %912 = vmatpush3.msra.mxu1 %v821_v61  ;;  %v838_v17 = vunpack.c.h.bf16 %v897_v12 }
  0x69   :  { %456 = vmatprep.subr.mxu0 %v285_v19  ;;  %913 = vmatprep.subr.mxu1 %v850_v62  ;;  %v896_v19 = vld [vmem:[#allocation5 + $0x50] sm:$0xff]   ;;  %v299_v62 = vrot.slane %v294_v59, %v298_v58 }
  0x6a   :  { %457 = vmatpush1.msra.mxu0 %v284_v20  ;;  %914 = vmatpush3.msra.mxu1 %v818_v63  ;;  %v837_v20 = vunpack.c.l.bf16 %v897_v12  ;;  %v303_v63 = vrot.slane %v294_v59, %v302_v60 }
  0x6b   :  { %458 = vmatprep.subr.mxu0 %v283_v22  ;;  %915 = vmatprep.subr.mxu1 %v849_v1  ;;  %v805_v22 = vunpack.c.l.bf16 %v889_v14  ;;  %v902_v14 = vld [vmem:[%s1188_s3 + $0x8] sm:$0xff]  }
  0x6c   :  { %459 = vmatpush1.msra.mxu0 %v282_v23  ;;  %916 = vmatpush3.msra.mxu1 %v817_v3  ;;  %v834_v23 = vunpack.c.h.bf16 %v896_v19 }
  0x6d   :  { %460 = vmatprep.subr.mxu0 %v281_v25  ;;  %917 = vmatprep.subr.mxu1 %v846_v4  ;;  %v833_v25 = vunpack.c.l.bf16 %v896_v19 }
  0x6e   :  { %461 = vmatpush1.msra.mxu0 %v280_v26  ;;  %918 = vmatpush3.msra.mxu1 %v814_v5  ;;  %v801_v26 = vunpack.c.l.bf16 %v888_v21 }
  0x6f   :  { %462 = vmatprep.subr.mxu0 %v279_v28  ;;  %919 = vmatprep.subr.mxu1 %v845_v7  ;;  %v830_v28 = vunpack.c.h.bf16 %v895_v27 }
  0x70   :  { %463 = vmatpush1.msra.mxu0 %v278_v29  ;;  %920 = vmatpush3.msra.mxu1 %v813_v9  ;;  %v887_v29 = vld [vmem:[#allocation5 + $0x8] sm:$0xff]  }
  0x71   :  { %464 = vmatprep.subr.mxu0 %v277_v31  ;;  %921 = vmatprep.subr.mxu1 %v842_v10  ;;  %v798_v30 = vunpack.c.h.bf16 %v887_v29  ;;  %v829_v31 = vunpack.c.l.bf16 %v895_v27  ;;  %v790_v27 = vld [vmem:[%s1189_s4 + $0x3] ss:$0 sm:$0xff] }
  0x72   :  { %465 = vmatpush1.msra.mxu0 %v276_v32  ;;  %922 = vmatpush3.msra.mxu1 %v810_v11  ;;  %v797_v32 = vunpack.c.l.bf16 %v887_v29 }
  0x73   :  { %466 = vmatprep.subr.mxu0 %v275_v34  ;;  %923 = vmatprep.subr.mxu1 %v841_v13  ;;  %v826_v34 = vunpack.c.h.bf16 %v894_v33 }
  0x74   :  { %467 = vmatpush1.msra.mxu0 %v274_v35  ;;  %924 = vmatpush3.msra.mxu1 %v809_v15  ;;  %v792_v35 = vld [vmem:[#allocation5] sm:$0xff]   ;;  %v862_v15 = vunpack.c.h.bf16 %v902_v14 }
  0x75   :  { %468 = vmatprep.subr.mxu0 %v273_v37  ;;  %925 = vmatprep.subr.mxu1 %v838_v17  ;;  %v794_v36 = vunpack.c.h.bf16 %v792_v35  ;;  %v825_v37 = vunpack.c.l.bf16 %v894_v33  ;;  %v861_v17 = vunpack.c.l.bf16 %v902_v14 }
  0x76   :  { %469 = vmatpush1.msra.mxu0 %v272_v38  ;;  %926 = vmatpush3.msra.mxu1 %v806_v18  ;;  %v793_v38 = vunpack.c.l.bf16 %v792_v35  ;;  %v856_v18 = vld [vmem:[%s1188_s3] sm:$0xff]  }
  0x77   :  { %470 = vmatprep.subr.mxu0 %v271_v40  ;;  %927 = vmatprep.subr.mxu1 %v837_v20  ;;  %v907_v40 = vld [vmem:[%s1188_s3 + $0x30] sm:$0xff]   ;;  %v858_v19 = vunpack.c.h.bf16 %v856_v18  ;;  %v857_v20 = vunpack.c.l.bf16 %v856_v18 }
  0x78   :  { %471 = vmatpush1.msra.mxu0 %v270_v41  ;;  %928 = vmatpush3.msra.mxu1 %v805_v22  ;;  %v886_v41 = vunpack.c.h.bf16 %v908_v39  ;;  %v881_v45 = vunpack.c.l.bf16 %v907_v40  ;;  %v789_v22 = vld [vmem:[%s1189_s4 + $0x2] ss:$0 sm:$0xff] }
  0x79   :  { %472 = vmatprep.subr.mxu0 %v269_v43  ;;  %929 = vmatprep.subr.mxu1 %v834_v23  ;;  %v882_v43 = vunpack.c.h.bf16 %v907_v40 }
  0x7a   :  { %473 = vmatpush1.msra.mxu0 %v268_v44  ;;  %930 = vmatpush3.msra.mxu1 %v802_v24  ;;  %v906_v44 = vld [vmem:[%s1188_s3 + $0x28] sm:$0xff]  }
  0x7b   :  { %474 = vmatprep.subr.mxu0 %v267_v46  ;;  %931 = vmatprep.subr.mxu1 %v833_v25  ;;  %v878_v46 = vunpack.c.h.bf16 %v906_v44  ;;  %v877_v48 = vunpack.c.l.bf16 %v906_v44 }
  0x7c   :  { %475 = vmatpush1.msra.mxu0 %v266_v47  ;;  %932 = vmatpush3.msra.mxu1 %v801_v26  ;;  %v905_v47 = vld [vmem:[%s1188_s3 + $0x20] sm:$0xff]  }
  0x7d   :  { %476 = vmatprep.subr.mxu0 %v265_v49  ;;  %933 = vmatprep.subr.mxu1 %v830_v28  ;;  %v874_v49 = vunpack.c.h.bf16 %v905_v47 }
  0x7e   :  { %477 = vmatpush1.msra.mxu0 %v264_v50  ;;  %934 = vmatpush3.msra.mxu1 %v798_v30  ;;  %v904_v50 = vld [vmem:[%s1188_s3 + $0x18] sm:$0xff]  }
  0x7f   :  { %478 = vmatprep.subr.mxu0 %v263_v51  ;;  %935 = vmatprep.subr.mxu1 %v829_v31  ;;  %v873_v51 = vunpack.c.l.bf16 %v905_v47  ;;  %v869_v54 = vunpack.c.l.bf16 %v904_v50 }
  0x80   :  { %479 = vmatpush1.msra.mxu0 %v262_v52  ;;  %936 = vmatpush3.msra.mxu1 %v797_v32  ;;  %v870_v52 = vunpack.c.h.bf16 %v904_v50 }
  0x81   :  { %513 = vmatmul.mubr.f32.vlgmr.msra.gmra.mxu0 %v53_v53  ;;  %961 = vmatprep.subr.mxu0 %v1077_v16  ;;  %v903_v53 = vld [vmem:[%s1188_s3 + $0x10] sm:$0xff]  }
  0x82   :  { %937 = vmatprep.subr.mxu1 %v826_v34  ;;  %962 = vmatpush3.msra.mxu0 %v886_v41  ;;  %v866_v55 = vunpack.c.h.bf16 %v903_v53  ;;  %v865_v13 = vunpack.c.l.bf16 %v903_v53 }
  0x83   :  { %938 = vmatpush3.msra.mxu1 %v794_v36  ;;  %963 = vmatprep.subr.mxu0 %v1077_v16 }
  0x84   :  { %939 = vmatprep.subr.mxu1 %v825_v37  ;;  %964 = vmatpush3.msra.mxu0 %v885_v42 }
  0x85   :  { %940 = vmatpush3.msra.mxu1 %v793_v38  ;;  %965 = vmatprep.subr.mxu0 %v1077_v16 }
  0x86   :  { %966 = vmatpush3.msra.mxu0 %v882_v43  ;;  %993 = vmatprep.mubr.msk.f32.mxu0 %vm1078_vm0, %v1077_v16 }
  0x87   :  { %967 = vmatprep.subr.mxu0 %v1077_v16 }
  0x88   :  { %968 = vmatpush3.msra.mxu0 %v881_v45 }
  0x89   :  { %969 = vmatprep.subr.mxu0 %v1077_v16 }
  0x8a   :  { %970 = vmatpush3.msra.mxu0 %v878_v46 }
  0x8b   :  { %971 = vmatprep.subr.mxu0 %v1077_v16 }
  0x8c   :  { %972 = vmatpush3.msra.mxu0 %v877_v48 }
  0x8d   :  { %973 = vmatprep.subr.mxu0 %v1077_v16 }
  0x8e   :  { %974 = vmatpush3.msra.mxu0 %v874_v49 }
  0x8f   :  { %975 = vmatprep.subr.mxu0 %v1077_v16 }
  0x90   :  { %976 = vmatpush3.msra.mxu0 %v873_v51 }
  0x91   :  { %977 = vmatprep.subr.mxu0 %v1077_v16 }
  0x92   :  { %978 = vmatpush3.msra.mxu0 %v870_v52 }
  0x93   :  { %979 = vmatprep.subr.mxu0 %v1077_v16 }
  0x94   :  { %980 = vmatpush3.msra.mxu0 %v869_v54 }
  0x95   :  { %981 = vmatprep.subr.mxu0 %v1077_v16 }
  0x96   :  { %982 = vmatpush3.msra.mxu0 %v866_v55 }
  0x97   :  { %983 = vmatprep.subr.mxu0 %v1077_v16 }
  0x98   :  { %984 = vmatpush3.msra.mxu0 %v865_v13 }
  0x99   :  { %985 = vmatprep.subr.mxu0 %v1077_v16 }
  0x9a   :  { %986 = vmatpush3.msra.mxu0 %v862_v15 }
  0x9b   :  { %987 = vmatprep.subr.mxu0 %v1077_v16 }
  0x9c   :  { %988 = vmatpush3.msra.mxu0 %v861_v17 }
  0x9d   :  { %989 = vmatprep.subr.mxu0 %v1077_v16 }
  0x9e   :  { %990 = vmatpush3.msra.mxu0 %v858_v19 }
  0x9f   :  { %991 = vmatprep.subr.mxu0 %v1077_v16 }
  0xa0   :  { %992 = vmatpush3.msra.mxu0 %v857_v20 }
 0x120   :  { %v372_v61 = vpop.f32.mrf.mxu0 }
 0x121   :  { %v373_v2 = vadd.f32 %v372_v61, %v299_v62 }
 0x122   :  { %v374_v0 = vpop.f32.mrf.mxu0 }
 0x123   :  { %v443_v1 = vpop.f32.mrf.mxu1  ;;  %v375_v3 = vadd.f32 %v374_v0, %v303_v63 }
 0x124   :  { %v444_v5 = vadd.f32 %v443_v1, %v373_v2 }
 0x125   :  { %v445_v4 = vpop.f32.mrf.mxu1 }
 0x126   :  { %v446_v7 = vadd.f32 %v445_v4, %v375_v3 }
 0x141   :  { %v514_v6 = vpop.f32.mrf.mxu0 }
 0x142   :  { %v515_v8 = vadd.f32 %v514_v6, %v444_v5 }
 0x143   :  { %v516_v9 = vpop.f32.mrf.mxu0 }
 0x144   :  { %v517_v10 = vadd.f32 %v516_v9, %v446_v7  ;;  %v519_v12 = vmax.f32 %v515_v8, 0.0 }
 0x146   :  { %v520_v11 = vmax.f32 %v517_v10, 0.0 }
 0x148   :  { %656 = vmatprep.mubr.f32.mxu1 %v520_v11 }
 0x149   :  { %657 = vmatmul.mubr.f32.vlgmr.msra.gmra.mxu1 %v519_v12 }
 0x209   :  { %v941_v21 = vpop.f32.mrf.mxu1 }
 0x20b   :  { %v942_v23 = vpop.f32.mrf.mxu1 }
 0x20c   :  { %v943_v24 = vadd.f32 %v942_v23, %v941_v21 }
 0x20e   :  { %v659_v25 = vadd.f32 %v943_v24, %v789_v22 }
 0x210   :  { %v662_v26 = vmax.f32 %v659_v25, 0.0 }
 0x212   :  { %994 = vmatmul.mubr.f32.vlgmr.msra.gmra.mxu0 %v662_v26 }
 0x2d2   :  { %v768_v28 = vpop.f32.mrf.mxu0 }
 0x2d3   :  { %v769_v29 = vadd.f32 %v790_v27, %v768_v28 }
 0x2d4   :  { %v995_v16 = vpop.f32.mrf.mxu0 }
 0x2d5   :  { %772 = vst [vmem:[#allocation7] sm:$0xff] %v769_v29 }
 0x2d6   :  { %1056 = shalt.err (!%p1053_p0)
}
 0x2d7   :  { %782 = dma.vmem_to_hbm [thread:$0]  %s780_s9, 128, %s1190_s5, [#allocation4]  }
 0x2d8   :  { %1069 = dma.done.wait [#allocation4], 128  }
 0x2d9   :  { %1070 = vsyncadd [#allocation4], 4294967168 }
 0x2da   :  { %786 = vsyncpa [#allocation3], 1 }
 0x2db   :  { %787 = vsyncpa [#allocation6], 1 }
 0x2dc   :  { %788 = vsyncpa [#allocation4], 1 }

</bundles_post_ra>
